<compile_context>
chip_gen: v6e
topology: v6e:2x2x1
jax: 0.10.0
libtpu: 0.0.40
codegen_flags: <defaults>
</compile_context>

<pallas_src>
import functools
import math

import jax
import jax.numpy as jnp
from jax.experimental import pallas as pl
from jax.experimental.pallas import tpu as pltpu

_EPS = 1e-18


def _round_up(x, m):
    return (x + m - 1) // m * m


def _dwu_rows_kernel(pred_ref, z_ref, u_ref, d_ref, *, log_norm):
    """Per-row raw values for one TB-row tile of the batch.

    pred_ref: (TB, C)   log-softmax rows
    z_ref:    (TB, NZ)  flattened latent rows
    u_ref:    (1, TB)   log(entropy + eps)   (raw, un-normalized)
    d_ref:    (1, TB)   N(0, I) log-prob     (raw, un-normalized)
    """
    pred = pred_ref[...].astype(jnp.float32)
    z = z_ref[...].astype(jnp.float32)

    # Entropy(x) = -sum(exp(x) * x, axis=-1)
    ent = -jnp.sum(jnp.exp(pred) * pred, axis=-1)          # (TB,)
    u_ref[0, :] = jnp.log(ent + _EPS)

    # N(0, I).log_prob(z) = -0.5 * ||z||^2 - 0.5 * nz * log(2*pi)
    ssq = jnp.sum(z * z, axis=-1)                          # (TB,)
    d_ref[0, :] = -0.5 * ssq + log_norm


def density_weighted_uncertainty(pred, z):
    """pred: (B, C) log-softmax rows; z: (B, ...) latent.  Returns (B,) f32."""
    B, C = pred.shape
    z_flat = z.reshape(B, -1)
    NZ = z_flat.shape[1]

    # VMEM footprint per batch row: inputs keep their caller dtype but are
    # laid out with the lane dim padded to 128; add the f32 working copies
    # created inside the kernel.
    c_lanes = _round_up(C, 128)
    nz_lanes = _round_up(NZ, 128)
    row_bytes = (c_lanes * (pred.dtype.itemsize + 4)
                 + nz_lanes * (z_flat.dtype.itemsize + 4))

    # Largest batch tile in {512, 256, 128} whose double-buffered input blocks
    # stay inside a conservative 16 MiB budget (safe for v5e/v6e/v7x VMEM).
    TB = 512
    while TB > 128 and 2 * 2 * TB * row_bytes > 16 * 1024 * 1024:
        TB //= 2

    if B <= TB:
        # Single block covering the whole (small) batch: every block dim
        # equals the full array dim, so no (8,128) padding and no pad-copies.
        TB = B
        B_pad = B
    else:
        B_pad = _round_up(B, TB)

    pred_in, z_in = pred, z_flat
    if B_pad != B:
        # Zero rows give finite results and are sliced off before the min/max.
        pred_in = jnp.pad(pred, ((0, B_pad - B), (0, 0)))
        z_in = jnp.pad(z_flat, ((0, B_pad - B), (0, 0)))

    kernel = functools.partial(
        _dwu_rows_kernel, log_norm=-0.5 * NZ * math.log(2.0 * math.pi))

    u_raw, d_raw = pl.pallas_call(
        kernel,
        out_shape=(jax.ShapeDtypeStruct((1, B_pad), jnp.float32),
                   jax.ShapeDtypeStruct((1, B_pad), jnp.float32)),
        grid_spec=pltpu.PrefetchScalarGridSpec(
            num_scalar_prefetch=0,
            grid=(B_pad // TB,),
            in_specs=[
                pl.BlockSpec((TB, C), lambda i: (i, 0)),
                pl.BlockSpec((TB, NZ), lambda i: (i, 0)),
            ],
            out_specs=[
                pl.BlockSpec((1, TB), lambda i: (0, i)),
                pl.BlockSpec((1, TB), lambda i: (0, i)),
            ],
        ),
        compiler_params=pltpu.CompilerParams(
            dimension_semantics=("parallel",),
            vmem_limit_bytes=32 * 1024 * 1024,
        ),
    )(pred_in, z_in)

    u_raw = u_raw[0, :B]
    d_raw = d_raw[0, :B]

    # Batch-global min/max normalization: O(B) scalars, done in plain JAX.
    u = u_raw - jnp.min(u_raw)
    u = u / (jnp.max(u) + _EPS)
    d = d_raw - jnp.min(d_raw)
    d = d / (jnp.max(d) + _EPS)
    return u + d


def _reference(pred, z):
    """Pure-JAX reference mirroring the PyTorch module."""
    eps = 1e-18
    ent = -jnp.sum(jnp.exp(pred) * pred, axis=-1)
    u = jnp.log(ent + eps)
    u = u - jnp.min(u)
    u = u / (jnp.max(u) + eps)
    zf = z.reshape(z.shape[0], -1).astype(jnp.float32)
    nz = zf.shape[-1]
    d = -0.5 * jnp.sum(zf * zf, axis=-1) - 0.5 * nz * jnp.log(2.0 * jnp.pi)
    d = d - jnp.min(d)
    d = d / (jnp.max(d) + eps)
    return u + d


if __name__ == "__main__":
    key = jax.random.PRNGKey(0)
    k1, k2 = jax.random.split(key)

    B, C = 8, 16
    # z is NCHW with C*H*W == 100 (nz of the default MultivariateLogProb(100))
    z = jax.random.normal(k2, (B, 4, 5, 5), dtype=jnp.float32)
    logits = jax.random.normal(k1, (B, C), dtype=jnp.float32)
    pred = jax.nn.log_softmax(logits, axis=-1)   # module expects log-softmax input

    out = density_weighted_uncertainty(pred, z)
    out = jax.block_until_ready(out)

    ref = _reference(pred, z)
    assert out.shape == (B,)
    assert jnp.allclose(out, ref, atol=1e-5, rtol=1e-5), (out, ref)
    print("KERNEL_OK")
</pallas_src>

<mosaic_0001>
module attributes {stable_mosaic.version = 11 : i64} {
  func.func @_dwu_rows_kernel(%arg0: i32, %arg1: memref<8x16xf32, #tpu.memory_space<vmem>>, %arg2: memref<8x100xf32, #tpu.memory_space<vmem>>, %arg3: memref<1x8xf32, #tpu.memory_space<vmem>>, %arg4: memref<1x8xf32, #tpu.memory_space<vmem>>) attributes {dimension_semantics = [#tpu.dimension_semantics<parallel>], iteration_bounds = array<i64: 1>, scalar_prefetch = 0 : i64, scratch_operands = 0 : i64, tpu.core_type = #tpu.core_type<tc>, window_params = [{transform_indices = @transform_0, window_bounds = array<i64: 8, 16>}, {transform_indices = @transform_1, window_bounds = array<i64: 8, 100>}, {transform_indices = @transform_2, window_bounds = array<i64: 1, 8>}, {transform_indices = @transform_3, window_bounds = array<i64: 1, 8>}]} {
    %c0 = arith.constant 0 : index
    %c0_0 = arith.constant 0 : index
    %0 = vector.load %arg1[%c0, %c0_0] : memref<8x16xf32, #tpu.memory_space<vmem>>, vector<8x16xf32>
    %c0_1 = arith.constant 0 : index
    %c0_2 = arith.constant 0 : index
    %1 = vector.load %arg2[%c0_1, %c0_2] : memref<8x100xf32, #tpu.memory_space<vmem>>, vector<8x100xf32>
    %2 = math.exp %0 : vector<8x16xf32>
    %3 = arith.mulf %2, %0 : vector<8x16xf32>
    %cst = arith.constant dense<0.000000e+00> : vector<8xf32>
    %4 = vector.multi_reduction <add>, %3, %cst [1] : vector<8x16xf32> to vector<8xf32>
    %cst_3 = arith.constant 0.000000e+00 : f32
    %5 = vector.broadcast %cst_3 : f32 to vector<8xf32>
    %6 = arith.subf %5, %4 : vector<8xf32>
    %cst_4 = arith.constant 1.000000e-18 : f32
    %7 = vector.broadcast %cst_4 : f32 to vector<8xf32>
    %8 = arith.addf %6, %7 : vector<8xf32>
    %9 = math.log %8 : vector<8xf32>
    %c0_5 = arith.constant 0 : index
    %c0_6 = arith.constant 0 : index
    %10 = vector.load %arg3[%c0_5, %c0_6] : memref<1x8xf32, #tpu.memory_space<vmem>>, vector<1x8xf32>
    %11 = vector.shape_cast %10 : vector<1x8xf32> to vector<8xf32>
    %12 = vector.shape_cast %9 : vector<8xf32> to vector<1x8xf32>
    tpu.vector_store %arg3[%c0_5, %c0_6], %12 {strides = array<i32>} : memref<1x8xf32, #tpu.memory_space<vmem>>, vector<1x8xf32>,
    %13 = arith.mulf %1, %1 : vector<8x100xf32>
    %cst_7 = arith.constant dense<0.000000e+00> : vector<8xf32>
    %14 = vector.multi_reduction <add>, %13, %cst_7 [1] : vector<8x100xf32> to vector<8xf32>
    %cst_8 = arith.constant -5.000000e-01 : f32
    %15 = vector.broadcast %cst_8 : f32 to vector<8xf32>
    %16 = arith.mulf %15, %14 : vector<8xf32>
    %cst_9 = arith.constant -91.8938522 : f32
    %17 = vector.broadcast %cst_9 : f32 to vector<8xf32>
    %18 = arith.addf %16, %17 : vector<8xf32>
    %c0_10 = arith.constant 0 : index
    %c0_11 = arith.constant 0 : index
    %19 = vector.load %arg4[%c0_10, %c0_11] : memref<1x8xf32, #tpu.memory_space<vmem>>, vector<1x8xf32>
    %20 = vector.shape_cast %19 : vector<1x8xf32> to vector<8xf32>
    %21 = vector.shape_cast %18 : vector<8xf32> to vector<1x8xf32>
    tpu.vector_store %arg4[%c0_10, %c0_11], %21 {strides = array<i32>} : memref<1x8xf32, #tpu.memory_space<vmem>>, vector<1x8xf32>,
    return
  }
  func.func @transform_0(%arg0: i32) -> (i32, i32) {
    %c0_i32 = arith.constant 0 : i32
    %c0_i32_0 = arith.constant 0 : i32
    return %arg0, %c0_i32 : i32, i32
  }
  func.func @transform_1(%arg0: i32) -> (i32, i32) {
    %c0_i32 = arith.constant 0 : i32
    %c0_i32_0 = arith.constant 0 : i32
    return %arg0, %c0_i32 : i32, i32
  }
  func.func @transform_2(%arg0: i32) -> (i32, i32) {
    %c0_i32 = arith.constant 0 : i32
    %c0_i32_0 = arith.constant 0 : i32
    return %c0_i32, %arg0 : i32, i32
  }
  func.func @transform_3(%arg0: i32) -> (i32, i32) {
    %c0_i32 = arith.constant 0 : i32
    %c0_i32_0 = arith.constant 0 : i32
    return %c0_i32, %arg0 : i32, i32
  }
}

</mosaic_0001>

<bundles_post_ra>
// kernel: tpu_custom_call.1
= control target key start
LH: loop header
LB: loop body
LE: loop exit
PB: predicated region body
PF: predicated region fallthrough
CT: control target
= control target key end

     0   :  { %9 = vsyncpa [#allocation3], 0  ;;  %s240_s0 = inlined_call_operand.hbm [shape: f32[8,16], index: 0, kind: input, shape index: {}]   ;;  %s241_s1 = inlined_call_operand.hbm [shape: f32[8,100], index: 1, kind: input, shape index: {}]   ;;  %s242_s2 = inlined_call_operand.hbm [shape: f32[1,8], index: 2, kind: output, shape index: {0}]   ;;  %s243_s3 = inlined_call_operand.hbm [shape: f32[1,8], index: 3, kind: output, shape index: {1}]  }
   0x1   :  { %10 = vsyncpa [#allocation6], 0 }
   0x2   :  { %11 = vsyncpa [#allocation4], 0 }
   0x3   :  { %12 = vsyncpa [#allocation9], 0  ;;  %s202_s12 = smov [#allocation2]   ;;  %s203_s14 = smov [#allocation5]  }
   0x4   :  { %s19_s13 = sshll.u32 %s202_s12, 4  ;;  %s29_s15 = sshll.u32 %s203_s14, 4  ;;  %s20_s13 = int_to_ptr.vmem [resolvable:$true] %s19_s13  ;;  %s30_s15 = int_to_ptr.vmem [resolvable:$true] %s29_s15 }
   0x5   :  { %s122_s16 = scalar_lea.vmem %s20_s13, 128  ;;  %p127_p1 = scmp.lt.s32.totalorder %s20_s13, %s20_s13 }
   0x6   :  { %p123_p0 = scmp.ne.s32.totalorder %s20_s13, %s122_s16  ;;  %p128_p2 = scmp.lt.s32.totalorder %s122_s16, %s122_s16 }
   0x8   :  { %p129_p3 = por %p128_p2, %p127_p1 }
   0xa   :  { %p130_p4 = pnand %p129_p3, %p123_p0 }
   0xc   :  { %133 = shalt.err (!%p130_p4)
}
   0xd   :  { %22 = dma.hbm_to_vmem [thread:$0]  %s240_s0, 128, %s20_s13, [#allocation3]  }
   0xe   :  { %s142_s19 = scalar_lea.vmem %s30_s15, 128  ;;  %p147_p6 = scmp.lt.s32.totalorder %s30_s15, %s30_s15 }
   0xf   :  { %p143_p5 = scmp.ne.s32.totalorder %s30_s15, %s142_s19  ;;  %p148_p7 = scmp.lt.s32.totalorder %s142_s19, %s142_s19 }
  0x11   :  { %p149_p8 = por %p148_p7, %p147_p6 }
  0x13   :  { %p150_p9 = pnand %p149_p8, %p143_p5 }
  0x15   :  { %153 = shalt.err (!%p150_p9)
}
  0x16   :  { %32 = dma.hbm_to_vmem [thread:$0]  %s241_s1, 128, %s30_s15, [#allocation6]  }
  0x17   :  { %194 = dma.done.wait [#allocation3], 128  }
  0x18   :  { %195 = vsyncadd [#allocation3], 4294967168 }
  0x19   :  { %196 = dma.done.wait [#allocation6], 128  }
  0x1a   :  { %197 = vsyncadd [#allocation6], 4294967168  ;;  %v39_v0 = vld [vmem:[#allocation2] sm:$0xff]  ;;  %v40_v2 = vld [vmem:[#allocation5] sm:$0xff]  ;;  %vm44_vm0 = vcmask 130048   ;;  %vm63_vm1 = vcmask 818176   ;;  %v53_v8 = vlaneseq }
  0x1b   :  { %v41_v1 = vmul.f32 1.442695, %v39_v0  ;;  %v62_v5 = vmul.f32 %v40_v2, %v40_v2  ;;  %s204_s0 = smov [#allocation8]   ;;  %vm60_vm2 = vcmask 57344  }
  0x1c   :  { %v54_v11 = vand.u32 127, %v53_v8  ;;  %v56_v12 = vshrl.u32 %v53_v8, 7  ;;  %s92_s1 = sshll.u32 %s204_s0, 4  ;;  %s93_s1 = int_to_ptr.vmem [resolvable:$true] %s92_s1 }
  0x1d   :  { %110 = vpow2.f32 %v41_v1  ;;  %v64_v7 = vsel %vm63_vm1, %v62_v5, 0.0  ;;  %s154_s22 = scalar_lea.vmem %s93_s1, 16  ;;  %s158_s23 = scalar_lea.vmem %s93_s1, 32 }
  0x1e   :  { %v57_v15 = vsub.s32 %v54_v11, %v56_v12  ;;  %p155_p10 = scmp.ne.s32.totalorder %s93_s1, %s154_s22  ;;  %p159_p11 = scmp.lt.s32.totalorder %s93_s1, %s93_s1 }
  0x1f   :  { %p160_p12 = scmp.lt.s32.totalorder %s158_s23, %s154_s22 }
  0x21   :  { %p161_p13 = por %p160_p12, %p159_p11 }
  0x23   :  { %p162_p0 = pnand %p161_p13, %p155_p10 }
  0x2a   :  { %v111_v3 = vpop.eup %110 }
  0x2b   :  { %v43_v4 = vmul.f32 %v111_v3, %v39_v0 }
  0x2d   :  { %v45_v6 = vsel %vm44_vm0, %v43_v4, 0.0 }
  0x2e   :  { %46 = vadd.xlane.f32.xlu0 %v45_v6 }
  0x32   :  { %65 = vadd.xlane.f32.xlu0 %v64_v7 }
  0xb7   :  { %v47_v9 = vpop.xlane.xlu0 %46 }
  0xb8   :  { %v48_v10 = vsub.f32 0.0, %v47_v9 }
  0xba   :  { %v49_v13 = vadd.f32 1e-18, %v48_v10 }
  0xbb   :  { %v66_v14 = vpop.xlane.xlu0 %65 }
  0xbc   :  { %112 = vlog2.f32 %v49_v13  ;;  %v67_v16 = vmul.f32 -0.5, %v66_v14 }
  0xbe   :  { %v68_v17 = vadd.f32 -91.89385, %v67_v16 }
  0xc0   :  { %v73_v18 = vrot.slane %v68_v17, %v57_v15 }
  0xc2   :  { %75 = vst.msk [vmem:[#allocation8] sm:$0x1] %vm60_vm2, %v73_v18 }
  0xc3   :  { %165 = shalt.err (!%p162_p0)
}
  0xc4   :  { %95 = dma.vmem_to_hbm [thread:$0]  %s93_s1, 16, %s243_s3, [#allocation9]  }
  0xc5   :  { %s205_s26 = smov [#allocation7]  }
  0xc6   :  { %s82_s27 = sshll.u32 %s205_s26, 4  ;;  %s83_s27 = int_to_ptr.vmem [resolvable:$true] %s82_s27 }
  0xc7   :  { %s174_s28 = scalar_lea.vmem %s83_s27, 16  ;;  %s178_s29 = scalar_lea.vmem %s83_s27, 32 }
  0xc8   :  { %p175_p1 = scmp.ne.s32.totalorder %s83_s27, %s174_s28  ;;  %p179_p2 = scmp.lt.s32.totalorder %s83_s27, %s83_s27 }
  0xc9   :  { %v113_v19 = vpop.eup %112  ;;  %p180_p3 = scmp.lt.s32.totalorder %s178_s29, %s174_s28 }
  0xca   :  { %v51_v20 = vmul.f32 0.6931472, %v113_v19 }
  0xcb   :  { %p181_p4 = por %p180_p3, %p179_p2 }
  0xcc   :  { %v58_v21 = vrot.slane %v51_v20, %v57_v15 }
  0xcd   :  { %p182_p5 = pnand %p181_p4, %p175_p1 }
  0xce   :  { %61 = vst.msk [vmem:[#allocation7] sm:$0x1] %vm60_vm2, %v58_v21 }
  0xcf   :  { %185 = shalt.err (!%p182_p5)
}
  0xd0   :  { %85 = dma.vmem_to_hbm [thread:$0]  %s83_s27, 16, %s242_s2, [#allocation4]  }
  0xd1   :  { %198 = dma.done.wait [#allocation4], 16  }
  0xd2   :  { %199 = vsyncadd [#allocation4], 4294967280 }
  0xd3   :  { %200 = dma.done.wait [#allocation9], 16  }
  0xd4   :  { %201 = vsyncadd [#allocation9], 4294967280 }
  0xd5   :  { %102 = vsyncpa [#allocation3], 1 }
  0xd6   :  { %103 = vsyncpa [#allocation6], 1 }
  0xd7   :  { %104 = vsyncpa [#allocation4], 1 }
  0xd8   :  { %105 = vsyncpa [#allocation9], 1 }

</bundles_post_ra>
